<compile_context>
chip_gen: v5e
topology: v5e:2x2
jax: 0.10.0
libtpu: 0.0.40
codegen_flags: <defaults>
</compile_context>

<pallas_src>
import math

import jax
import jax.numpy as jnp
from jax.experimental import pallas as pl
from jax.experimental.pallas import tpu as pltpu

_MIN_PALLAS_ELEMS = 1 << 17           # below this, let XLA fuse the broadcast add
_VMEM_USAGE_BUDGET = 32 * 1024 * 1024  # double-buffered in+out tiles stay under this
_VMEM_LIMIT_BYTES = 48 * 1024 * 1024   # explicit: > v5e 16 MiB default, < v7x 64 MiB physical
_MAX_LANE_WIDTH = 8192                 # cap for the lane-dense repack width L = lcm(D, 128)


def _cdiv(a, b):
    return -(-a // b)


def _add_emb_kernel(x_ref, emb_ref, o_ref):
    # x_ref: (TR, L) tile, emb_ref: (1, L) row -> sublane-broadcast add.
    # The add runs in the promoted dtype (e.g. bf16 + f32 -> f32), then casts.
    o_ref[...] = (x_ref[...] + emb_ref[...]).astype(o_ref.dtype)


def _add_mod_emb_2d(x2d, emb_row, *, tile_rows, out_dtype, donate=False):
    R, L = x2d.shape
    kwargs = {}
    if donate and jnp.dtype(out_dtype) == x2d.dtype:
        # Only useful when the caller actually donates x (e.g. jit donate_argnums);
        # otherwise XLA inserts a defensive copy.
        kwargs["input_output_aliases"] = {0: 0}
    return pl.pallas_call(
        _add_emb_kernel,
        out_shape=jax.ShapeDtypeStruct((R, L), out_dtype),
        grid=(pl.cdiv(R, tile_rows),),
        in_specs=[
            pl.BlockSpec((tile_rows, L), lambda i: (i, 0)),
            pl.BlockSpec((1, L), lambda i: (0, 0)),  # constant index -> stays resident
        ],
        out_specs=pl.BlockSpec((tile_rows, L), lambda i: (i, 0)),
        compiler_params=pltpu.CompilerParams(
            dimension_semantics=("parallel",),
            vmem_limit_bytes=_VMEM_LIMIT_BYTES,
        ),
        **kwargs,
    )(x2d, emb_row)


class GetModEmb:
    """JAX/Pallas port of get_mod_emb."""

    def __init__(self, inner_dim, flag, dropout=0.0, *, key,
                 min_pallas_elems=_MIN_PALLAS_ELEMS):
        assert flag in ("seq", "epoch")
        self.flag = flag
        self.inner_dim = inner_dim
        self.dropout = dropout  # p=0.0 default -> identity (matches eval behavior)
        self.min_pallas_elems = min_pallas_elems
        # trunc_normal_(std=0.02, a=-2, b=2) truncates at ABSOLUTE +/-2 (= +/-100 sigma
        # for std=0.02, i.e. effectively untruncated), so use +/-100 sigma bounds here.
        emb = 0.02 * jax.random.truncated_normal(
            key, -100.0, 100.0, (inner_dim,), dtype=jnp.float32
        )
        if flag == "seq":
            self.mod_emb = emb.reshape(1, 1, 1, inner_dim)
        else:
            self.mod_emb = emb.reshape(1, 1, inner_dim)

    def __call__(self, x, *, out_dtype=None, donate_input=False):
        D = self.inner_dim
        assert x.shape[-1] == D
        orig_shape = x.shape
        promoted = jnp.result_type(x.dtype, self.mod_emb.dtype)
        out_dtype = promoted if out_dtype is None else jnp.dtype(out_dtype)
        total = x.size

        # TODO(synk): dropout p>0 in training mode would need pltpu.prng_* masking;
        # the module default p=0.0 (and eval mode) is identity, so it is omitted.

        # Fast path: for small inputs (or when this add can fuse into neighboring
        # XLA ops) a standalone pallas_call only adds an extra HBM read+write.
        if total < self.min_pallas_elems:
            return (x + self.mod_emb).astype(out_dtype)

        emb1d = self.mod_emb.reshape(D)
        R = total // D

        # --- pick lane width L (lane-dense repack when D is not 128-aligned) ---
        if D % 128 == 0:
            L, group = D, 1
        else:
            L = math.lcm(D, 128)
            if L > _MAX_LANE_WIDTH:
                L, group = D, 1  # pathological D: natural layout (full-extent last dim)
            else:
                group = L // D

        R_main = (R // group) * group     # rows that form whole lane-dense groups
        if R_main == 0:
            return (x + self.mod_emb).astype(out_dtype)
        R2 = R_main // group              # rows of the (R2, L) lane-dense view

        emb_row = (jnp.tile(emb1d, group) if group > 1 else emb1d).reshape(1, L)

        # --- row tile: VMEM-budgeted, sublane-aligned, >= 8 grid steps ---
        x_item = jnp.dtype(x.dtype).itemsize
        o_item = jnp.dtype(out_dtype).itemsize
        sublane = max(8, 32 // max(1, min(x_item, o_item, 4)))  # 8 f32 / 16 bf16 / 32 i8
        if R2 <= sublane:
            tile_rows = R2  # single full-extent block (tiny slabs only)
        else:
            by_bytes = _VMEM_USAGE_BUDGET // (2 * L * (x_item + o_item))
            by_split = _cdiv(R2, 8)       # >= 8 steps -> >= 4 per TC on v7x, full pipeline
            tile_rows = max(sublane, (min(by_bytes, by_split) // sublane) * sublane)

        if R_main == R:
            # Divisible case: pure row-major regrouping, no data movement needed to
            # present the lane-dense (R2, L) view.
            x2d = x.reshape(R2, L)
            y2d = _add_mod_emb_2d(x2d, emb_row, tile_rows=tile_rows,
                                  out_dtype=out_dtype, donate=donate_input)
            return y2d.reshape(orig_shape)

        # Ragged case: kernel the aligned prefix, tiny XLA add for the <= (group-1)
        # tail rows (< L elements), stitch back.  No whole-array pad / un-pad slice.
        main = R_main * D
        x_flat = x.reshape(-1)
        x2d = x_flat[:main].reshape(R2, L)
        y2d = _add_mod_emb_2d(x2d, emb_row, tile_rows=tile_rows,
                              out_dtype=out_dtype, donate=donate_input)
        tail_emb = jnp.tile(emb1d, R - R_main)
        y_tail = (x_flat[main:] + tail_emb).astype(out_dtype)
        y = jnp.concatenate([y2d.reshape(-1), y_tail])
        return y.reshape(orig_shape)


if __name__ == "__main__":
    key = jax.random.PRNGKey(0)
    k_emb, k1, k2, k3, k4, k5 = jax.random.split(key, 6)

    inner_dim = 32
    mod_epoch = GetModEmb(inner_dim, "epoch", key=k_emb)
    mod_seq = GetModEmb(inner_dim, "seq", key=k_emb)

    # 1) flag='epoch', small (XLA fast path): x (B, S, D)
    x = jax.random.normal(k1, (2, 8, inner_dim), dtype=jnp.float32)
    y = mod_epoch(x)
    jax.block_until_ready(y)
    assert jnp.allclose(y, x + mod_epoch.mod_emb, atol=1e-6), "epoch small mismatch"

    # 2) flag='seq', small (XLA fast path): x (B, E, S, D)
    x = jax.random.normal(k2, (2, 4, 8, inner_dim), dtype=jnp.float32)
    y = mod_seq(x)
    jax.block_until_ready(y)
    assert jnp.allclose(y, x + mod_seq.mod_emb, atol=1e-6), "seq small mismatch"

    # 3) flag='epoch', Pallas path (lane-dense repack, multi-step parallel grid)
    x = jax.random.normal(k3, (8, 1024, inner_dim), dtype=jnp.float32)
    y = mod_epoch(x)
    jax.block_until_ready(y)
    assert jnp.allclose(y, x + mod_epoch.mod_emb, atol=1e-6), "epoch large mismatch"

    # 4) flag='epoch', Pallas path with ragged row count (prefix kernel + tiny tail)
    x = jax.random.normal(k4, (11, 733, inner_dim), dtype=jnp.float32)
    y = mod_epoch(x)
    jax.block_until_ready(y)
    assert jnp.allclose(y, x + mod_epoch.mod_emb, atol=1e-6), "epoch ragged mismatch"

    # 5) flag='seq', bf16 x + f32 param -> f32 out (PyTorch-style promotion)
    x = jax.random.normal(k5, (4, 8, 256, inner_dim), dtype=jnp.bfloat16)
    y = mod_seq(x)
    jax.block_until_ready(y)
    assert y.dtype == jnp.float32, "promotion dtype mismatch"
    ref = x.astype(jnp.float32) + mod_seq.mod_emb
    assert jnp.allclose(y, ref, atol=1e-6), "seq bf16 mismatch"

    # 6) Optional bf16 output path (halves the output HBM stream)
    y_bf = mod_seq(x, out_dtype=jnp.bfloat16)
    jax.block_until_ready(y_bf)
    assert y_bf.dtype == jnp.bfloat16, "bf16 out dtype mismatch"
    ref_bf = ref.astype(jnp.bfloat16)
    assert jnp.allclose(y_bf.astype(jnp.float32), ref_bf.astype(jnp.float32),
                        atol=1e-2), "seq bf16-out mismatch"

    print("KERNEL_OK")
</pallas_src>

<mosaic_0001>
module attributes {stable_mosaic.version = 11 : i64} {
  func.func @_add_emb_kernel(%arg0: i32, %arg1: memref<256x128xf32, #tpu.memory_space<vmem>>, %arg2: memref<1x128xf32, #tpu.memory_space<vmem>>, %arg3: memref<256x128xf32, #tpu.memory_space<vmem>>) attributes {dimension_semantics = [#tpu.dimension_semantics<parallel>], iteration_bounds = array<i64: 8>, scalar_prefetch = 0 : i64, scratch_operands = 0 : i64, tpu.core_type = #tpu.core_type<tc>, window_params = [{transform_indices = @transform_0, window_bounds = array<i64: 256, 128>}, {pipeline_mode = #tpu.pipeline_mode<synchronous>, transform_indices = @transform_1, window_bounds = array<i64: 1, 128>}, {transform_indices = @transform_2, window_bounds = array<i64: 256, 128>}]} {
    %c0 = arith.constant 0 : index
    %c0_0 = arith.constant 0 : index
    %0 = vector.load %arg1[%c0, %c0_0] : memref<256x128xf32, #tpu.memory_space<vmem>>, vector<256x128xf32>
    %c0_1 = arith.constant 0 : index
    %c0_2 = arith.constant 0 : index
    %1 = vector.load %arg2[%c0_1, %c0_2] : memref<1x128xf32, #tpu.memory_space<vmem>>, vector<1x128xf32>
    %2 = vector.broadcast %1 : vector<1x128xf32> to vector<256x128xf32>
    %3 = arith.addf %0, %2 : vector<256x128xf32>
    %c0_3 = arith.constant 0 : index
    %c0_4 = arith.constant 0 : index
    %4 = vector.load %arg3[%c0_3, %c0_4] : memref<256x128xf32, #tpu.memory_space<vmem>>, vector<256x128xf32>
    tpu.vector_store %arg3[%c0_3, %c0_4], %3 {strides = array<i32>} : memref<256x128xf32, #tpu.memory_space<vmem>>, vector<256x128xf32>,
    return
  }
  func.func @transform_0(%arg0: i32) -> (i32, i32) {
    %c0_i32 = arith.constant 0 : i32
    %c0_i32_0 = arith.constant 0 : i32
    return %arg0, %c0_i32 : i32, i32
  }
  func.func @transform_1(%arg0: i32) -> (i32, i32) {
    %c0_i32 = arith.constant 0 : i32
    %c0_i32_0 = arith.constant 0 : i32
    %c0_i32_1 = arith.constant 0 : i32
    return %c0_i32, %c0_i32_0 : i32, i32
  }
  func.func @transform_2(%arg0: i32) -> (i32, i32) {
    %c0_i32 = arith.constant 0 : i32
    %c0_i32_0 = arith.constant 0 : i32
    return %arg0, %c0_i32 : i32, i32
  }
}

</mosaic_0001>

<bundles_post_ra>
// kernel: tpu_custom_call.1
= control target key start
LH: loop header
LB: loop body
LE: loop exit
PB: predicated region body
PF: predicated region fallthrough
CT: control target
= control target key end

     0   :  { %7 = vsyncpa [#allocation3], 0  ;;  %s855_s0 = inlined_call_operand.hbm [shape: f32[2048,128], index: 0, kind: input, shape index: {}]   ;;  %s856_s1 = inlined_call_operand.hbm [shape: f32[1,128], index: 1, kind: input, shape index: {}]   ;;  %s857_s2 = inlined_call_operand.hbm [shape: f32[2048,128], index: 2, kind: output, shape index: {}]  }
   0x1   :  { %9 = vsyncpa [#allocation3 + $0x1], 0 }
   0x2   :  { %10 = vsyncpa [#allocation6], 0 }
   0x3   :  { %11 = vsyncpa [#allocation4], 0 }
   0x4   :  { %13 = vsyncpa [#allocation4 + $0x1], 0  ;;  %s612_s9 = smov 0   ;;  %s614_s10 = smov 0  }
   0x5   :  { %s616_s11 = smov 0   ;;  %s618_s12 = smov 0  }
   0x6 LB: > { %s633_s13 = sadd.s32 4294967295, %s590_s12   ;;  %s380_s14 = sadd.s32 4294967294, %s590_s12   ;;  %s590_s12 = sphi %s618_s12, %s867_s12   ;;  %s586_s11 = sphi %s616_s11, %s866_s11   ;;  %s582_s10 = sphi %s614_s10, %s865_s10   ;;  %s578_s9 = sphi %s612_s9, %s864_s9  }
   0x7   : > { %s637_s15 = sadd.s32 1, %s590_s12   ;;  %s26_s16 = sadd.s32 1, %s586_s11 }
   0x8   : > { %s23_s17 = ssub.s32 %s590_s12, %s637_s15  ;;  %p33_p0 = scmp.ne.s32.totalorder %s586_s11, %s582_s10 }
   0x9   : > { %p24_p1 = scmp.eq.s32.totalorder %s23_s17, 0  ;;  %p34_p2 = scmp.eq.s32.totalorder %s590_s12, 0 }
   0xa   : > { %p39_p3 = scmp.ne.s32.totalorder %s582_s10, %s578_s9  ;;  %p40_p4 = scmp.eq.s32.totalorder %s633_s13, 0 }
   0xb   : > { %s649_s18 = scalar_select %p24_p1, %s586_s11, %s26_s16  }
   0xc   : > { %p651_p5 = por %p34_p2, %p33_p0  ;;  %p657_p6 = por %p40_p4, %p39_p3 }
   0xd   : > { %p84_p7 = scmp.eq.s32.totalorder %s633_s13, 7  ;;  %p90_p8 = scmp.eq.s32.totalorder %s380_s14, 7 }
   0xe   : > { %p381_p9 = scmp.ge.s32.totalorder %s590_s12, 1  ;;  %p97_p10 = scmp.lt.s32.totalorder %s590_s12, 9 }
   0xf   : > { %p664_p11 = por %p84_p7, %p33_p0  ;;  %p668_p12 = por %p90_p8, %p39_p3 }
  0x10   : > { %p672_p13 = pnand %p381_p9, %p97_p10  ;;  %s109_s26 = sshll.u32 %s856_s1, 4  ;;  %s110_s26 = int_to_ptr.hbm [resolvable:$true] %s109_s26 }
  0x11   : > { %s592_s27 = smov [#allocation5]   ;;  %p419_p2 = scmp.lt.s32.totalorder %s590_s12, 8 }
  0x12   : > { %p406_p1 = pneg %p672_p13  ;;  %s111_s28 = sshll.u32 %s592_s27, 4  ;;  %s112_s28 = int_to_ptr.vmem [resolvable:$true] %s111_s28 }
  0x13   : > { %s122_s29 = sand.u32 1, %s586_s11   ;;  %p687_p3 = pnand %p419_p2, %p651_p5 }
  0x14   : > { %p407_p0 = pnand %p406_p1, %p40_p4  ;;  %s384_s3 = sshll.u32 %s122_s29, 8 }
  0x15   : > { %s396_s4 = sshll.u32 %s590_s12, 8  ;;  %s126_s14 = scalar_lea.vmem [#allocation2], %s384_s3 }
  0x16   : > { %409 = dma.hbm_to_vmem [thread:$0]  (!%p407_p0), %s110_s26, 16, %s112_s28, [#allocation6]  }
  0x17   : > { %s131_s7 = scalar_lea.hbm %s855_s0, %s396_s4  ;;  %s134_s16 = sshll.u32 %s126_s14, 4  ;;  %s135_s16 = int_to_ptr.vmem [resolvable:$true] %s134_s16 }
  0x18   : > { %s132_s8 = sshll.u32 %s131_s7, 4  ;;  %s123_s17 = scalar_lea.sflag [#allocation3], %s122_s29  ;;  %s133_s8 = int_to_ptr.hbm [resolvable:$true] %s132_s8 }
  0x19   : > { %s490_s24 = sshra.s32 %s133_s8, 4  ;;  %p494_p7 = pneg %p687_p3  ;;  %s491_s24 = int_to_ptr.hbm [resolvable:$true] %s490_s24 }
  0x1a   : > { %s492_s19 = scalar_lea.hbm %s491_s24, 256  ;;  %s497_s27 = scalar_lea.hbm %s855_s0, 2048 }
  0x1b   : > { %p493_p5 = scmp.ne.s32.totalorder %s491_s24, %s492_s19  ;;  %p498_p10 = scmp.lt.s32.totalorder %s491_s24, %s855_s0 }
  0x1c   : > { %p499_p1 = scmp.lt.s32.totalorder %s497_s27, %s492_s19 }
  0x1d   : > { %p495_p8 = pnand %p494_p7, %p493_p5 }
  0x1e   : > { %p500_p0 = por %p499_p1, %p498_p10 }
  0x1f   : > { %p496_p9 = pneg %p495_p8 }
  0x21   : > { %p501_p2 = pnand %p500_p0, %p496_p9 }
  0x23   : > { %504 = shalt.err (!%p501_p2)
}
  0x24   : > { %s593_s29 = smov 128   ;;  %s594_s3 = smov 8  }
  0x25   : > { %413 = dma.hbm_to_vmem [thread:$0]  (!%p687_p3), %s133_s8, 4096, %s135_s16, %s123_s17, %s593_s29, %s593_s29, %s594_s3  }
  0x26   : > { %146 = sbr.rel (%p672_p13) target bundleno = 85 (0x55), region = 28  ;;  %s708_s5 = sand.u32 (!%p672_p13), 1, %s582_s10  }
  0x27   : > { %s388_s6 = sshll.u32 (!%p672_p13), %s708_s5, 8  ;;  %s149_s7 = scalar_lea.sflag (!%p672_p13), [#allocation3], %s708_s5 }
  0x28   : > { %s712_s14 = scalar_lea.vmem (!%p672_p13), [#allocation2], %s388_s6 }
  0x2b   : > { %565 = dma.done.wait (%p657_p6), %s149_s7, 4096  }
  0x2c   : > { %567 = vsyncadd (%p657_p6), %s149_s7, 4294963200 }
  0x2d   : > { %569 = dma.done.wait (%p40_p4), [#allocation6], 16  }
  0x2e   : > { %571 = vsyncadd (%p40_p4), [#allocation6], 4294967280  ;;  %v181_v0 = vld [vmem:[%s712_s14] sm:$0xff]  ;;  %v182_v2 = vld [vmem:[%s712_s14 + $0x8] sm:$0xff]  ;;  %s735_s20 = scalar_lea.vmem [#allocation7], %s388_s6  ;;  %s397_s23 = sshll.u32 %s633_s13, 8 }
  0x2f   : > { %v723_v1 = vld [vmem:[#allocation5] ss:$0 sm:$0xff]  ;;  %v183_v3 = vld [vmem:[%s712_s14 + $0x10] sm:$0xff]  ;;  %v184_v4 = vld [vmem:[%s712_s14 + $0x18] sm:$0xff]  ;;  %s293_s13 = scalar_lea.hbm %s857_s2, %s397_s23  ;;  %s294_s16 = sshll.u32 %s735_s20, 4  ;;  %s295_s16 = int_to_ptr.vmem [resolvable:$true] %s294_s16 }
  0x30   : > { %v217_v5 = vadd.f32 %v723_v1, %v181_v0  ;;  %v218_v6 = vadd.f32 %v723_v1, %v182_v2  ;;  %v219_v7 = vadd.f32 %v723_v1, %v183_v3  ;;  %v185_v8 = vld [vmem:[%s712_s14 + $0x20] sm:$0xff]  ;;  %v186_v9 = vld [vmem:[%s712_s14 + $0x28] sm:$0xff]  ;;  %v220_v10 = vadd.f32 %v723_v1, %v184_v4  ;;  %v187_v11 = vld [vmem:[%s712_s14 + $0x30] sm:$0xff]  ;;  %s296_s17 = sshll.u32 %s293_s13, 4  ;;  %s282_s24 = scalar_lea.sflag [#allocation4], %s708_s5  ;;  %s297_s17 = int_to_ptr.hbm [resolvable:$true] %s296_s17 }
  0x31   : > { %v221_v12 = vadd.f32 %v723_v1, %v185_v8  ;;  %v188_v13 = vld [vmem:[%s712_s14 + $0x38] sm:$0xff]  ;;  %v222_v14 = vadd.f32 %v723_v1, %v186_v9  ;;  %v189_v15 = vld [vmem:[%s712_s14 + $0x40] sm:$0xff]  ;;  %v223_v16 = vadd.f32 %v723_v1, %v187_v11  ;;  %v190_v17 = vld [vmem:[%s712_s14 + $0x48] sm:$0xff]  ;;  %s534_s19 = sshra.s32 %s297_s17, 4  ;;  %s540_s28 = scalar_lea.hbm %s857_s2, 2048  ;;  %s535_s19 = int_to_ptr.hbm [resolvable:$true] %s534_s19 }
  0x32   : > { %249 = vst [vmem:[%s735_s20] sm:$0xff] %v217_v5  ;;  %v224_v18 = vadd.f32 %v723_v1, %v188_v13  ;;  %v191_v19 = vld [vmem:[%s712_s14 + $0x50] sm:$0xff]  ;;  %v225_v20 = vadd.f32 %v723_v1, %v189_v15  ;;  %v192_v21 = vld [vmem:[%s712_s14 + $0x58] sm:$0xff]  ;;  %v226_v22 = vadd.f32 %v723_v1, %v190_v17  ;;  %v193_v23 = vld [vmem:[%s712_s14 + $0x60] sm:$0xff]  ;;  %s536_s25 = scalar_lea.hbm %s535_s19, 256  ;;  %p541_p3 = scmp.lt.s32.totalorder %s535_s19, %s857_s2 }
  0x33   : > { %250 = vst [vmem:[%s735_s20 + $0x8] sm:$0xff] %v218_v6  ;;  %v227_v24 = vadd.f32 %v723_v1, %v191_v19  ;;  %v194_v25 = vld [vmem:[%s712_s14 + $0x68] sm:$0xff]  ;;  %v228_v26 = vadd.f32 %v723_v1, %v192_v21  ;;  %v195_v27 = vld [vmem:[%s712_s14 + $0x70] sm:$0xff]  ;;  %v229_v28 = vadd.f32 %v723_v1, %v193_v23  ;;  %v196_v29 = vld [vmem:[%s712_s14 + $0x78] sm:$0xff]  ;;  %p537_p4 = scmp.ne.s32.totalorder %s535_s19, %s536_s25  ;;  %p542_p5 = scmp.lt.s32.totalorder %s540_s28, %s536_s25 }
  0x34   : > { %251 = vst [vmem:[%s735_s20 + $0x10] sm:$0xff] %v219_v7  ;;  %v230_v30 = vadd.f32 %v723_v1, %v194_v25  ;;  %v197_v31 = vld [vmem:[%s712_s14 + $0x80] sm:$0xff]  ;;  %v231_v32 = vadd.f32 %v723_v1, %v195_v27  ;;  %v198_v33 = vld [vmem:[%s712_s14 + $0x88] sm:$0xff]  ;;  %v232_v34 = vadd.f32 %v723_v1, %v196_v29  ;;  %v199_v35 = vld [vmem:[%s712_s14 + $0x90] sm:$0xff] }
  0x35   : > { %252 = vst [vmem:[%s735_s20 + $0x18] sm:$0xff] %v220_v10  ;;  %v233_v36 = vadd.f32 %v723_v1, %v197_v31  ;;  %v200_v37 = vld [vmem:[%s712_s14 + $0x98] sm:$0xff]  ;;  %v234_v38 = vadd.f32 %v723_v1, %v198_v33  ;;  %v201_v39 = vld [vmem:[%s712_s14 + $0xa0] sm:$0xff]  ;;  %v235_v40 = vadd.f32 %v723_v1, %v199_v35  ;;  %v202_v41 = vld [vmem:[%s712_s14 + $0xa8] sm:$0xff]  ;;  %p538_p6 = pnand %p537_p4, %p664_p11  ;;  %p543_p7 = por %p542_p5, %p541_p3 }
  0x36   : > { %253 = vst [vmem:[%s735_s20 + $0x20] sm:$0xff] %v221_v12  ;;  %v236_v42 = vadd.f32 %v723_v1, %v200_v37  ;;  %v203_v43 = vld [vmem:[%s712_s14 + $0xb0] sm:$0xff]  ;;  %v237_v44 = vadd.f32 %v723_v1, %v201_v39  ;;  %v204_v45 = vld [vmem:[%s712_s14 + $0xb8] sm:$0xff]  ;;  %v238_v46 = vadd.f32 %v723_v1, %v202_v41  ;;  %v205_v47 = vld [vmem:[%s712_s14 + $0xc0] sm:$0xff] }
  0x37   : > { %254 = vst [vmem:[%s735_s20 + $0x28] sm:$0xff] %v222_v14  ;;  %v239_v48 = vadd.f32 %v723_v1, %v203_v43  ;;  %v206_v49 = vld [vmem:[%s712_s14 + $0xc8] sm:$0xff]  ;;  %v240_v50 = vadd.f32 %v723_v1, %v204_v45  ;;  %v207_v51 = vld [vmem:[%s712_s14 + $0xd0] sm:$0xff]  ;;  %v241_v52 = vadd.f32 %v723_v1, %v205_v47  ;;  %v208_v53 = vld [vmem:[%s712_s14 + $0xd8] sm:$0xff]  ;;  %p539_p13 = pneg %p538_p6 }
  0x38   : > { %255 = vst [vmem:[%s735_s20 + $0x30] sm:$0xff] %v223_v16  ;;  %v242_v54 = vadd.f32 %v723_v1, %v206_v49  ;;  %v209_v55 = vld [vmem:[%s712_s14 + $0xe0] sm:$0xff]  ;;  %v243_v56 = vadd.f32 %v723_v1, %v207_v51  ;;  %v210_v57 = vld [vmem:[%s712_s14 + $0xe8] sm:$0xff]  ;;  %v244_v58 = vadd.f32 %v723_v1, %v208_v53  ;;  %v211_v59 = vld [vmem:[%s712_s14 + $0xf0] sm:$0xff] }
  0x39   : > { %256 = vst [vmem:[%s735_s20 + $0x38] sm:$0xff] %v224_v18  ;;  %v245_v60 = vadd.f32 %v723_v1, %v209_v55  ;;  %v212_v61 = vld [vmem:[%s712_s14 + $0xf8] sm:$0xff]  ;;  %v246_v62 = vadd.f32 %v723_v1, %v210_v57  ;;  %v247_v63 = vadd.f32 %v723_v1, %v211_v59  ;;  %p544_p8 = pnand %p543_p7, %p539_p13 }
  0x3a   : > { %257 = vst [vmem:[%s735_s20 + $0x40] sm:$0xff] %v225_v20  ;;  %v248_v0 = vadd.f32 %v723_v1, %v212_v61 }
  0x3b   : > { %258 = vst [vmem:[%s735_s20 + $0x48] sm:$0xff] %v226_v22 }
  0x3c   : > { %259 = vst [vmem:[%s735_s20 + $0x50] sm:$0xff] %v227_v24 }
  0x3d   : > { %260 = vst [vmem:[%s735_s20 + $0x58] sm:$0xff] %v228_v26 }
  0x3e   : > { %261 = vst [vmem:[%s735_s20 + $0x60] sm:$0xff] %v229_v28 }
  0x3f   : > { %262 = vst [vmem:[%s735_s20 + $0x68] sm:$0xff] %v230_v30 }
  0x40   : > { %263 = vst [vmem:[%s735_s20 + $0x70] sm:$0xff] %v231_v32 }
  0x41   : > { %264 = vst [vmem:[%s735_s20 + $0x78] sm:$0xff] %v232_v34 }
  0x42   : > { %265 = vst [vmem:[%s735_s20 + $0x80] sm:$0xff] %v233_v36 }
  0x43   : > { %266 = vst [vmem:[%s735_s20 + $0x88] sm:$0xff] %v234_v38 }
  0x44   : > { %267 = vst [vmem:[%s735_s20 + $0x90] sm:$0xff] %v235_v40 }
  0x45   : > { %268 = vst [vmem:[%s735_s20 + $0x98] sm:$0xff] %v236_v42 }
  0x46   : > { %269 = vst [vmem:[%s735_s20 + $0xa0] sm:$0xff] %v237_v44 }
  0x47   : > { %270 = vst [vmem:[%s735_s20 + $0xa8] sm:$0xff] %v238_v46 }
  0x48   : > { %271 = vst [vmem:[%s735_s20 + $0xb0] sm:$0xff] %v239_v48 }
  0x49   : > { %272 = vst [vmem:[%s735_s20 + $0xb8] sm:$0xff] %v240_v50 }
  0x4a   : > { %273 = vst [vmem:[%s735_s20 + $0xc0] sm:$0xff] %v241_v52 }
  0x4b   : > { %274 = vst [vmem:[%s735_s20 + $0xc8] sm:$0xff] %v242_v54 }
  0x4c   : > { %275 = vst [vmem:[%s735_s20 + $0xd0] sm:$0xff] %v243_v56 }
  0x4d   : > { %276 = vst [vmem:[%s735_s20 + $0xd8] sm:$0xff] %v244_v58 }
  0x4e   : > { %277 = vst [vmem:[%s735_s20 + $0xe0] sm:$0xff] %v245_v60 }
  0x4f   : > { %278 = vst [vmem:[%s735_s20 + $0xe8] sm:$0xff] %v246_v62 }
  0x50   : > { %279 = vst [vmem:[%s735_s20 + $0xf0] sm:$0xff] %v247_v63 }
  0x51   : > { %280 = vst [vmem:[%s735_s20 + $0xf8] sm:$0xff] %v248_v0 }
  0x52   : > { %547 = shalt.err (!%p544_p8)
}
  0x53   : > { %s595_s3 = smov 128   ;;  %s596_s5 = smov 8  }
  0x54   : > { %404 = dma.vmem_to_hbm [thread:$0]  (%p664_p11), %s295_s16, 4096, %s297_s17, %s282_s24, %s595_s3, %s595_s3, %s596_s5  }
  0x55 PF: > { %p421_p9 = scmp.ge.s32.totalorder %s590_s12, 2  ;;  %s311_s6 = sand.u32 1, %s578_s9  }
  0x56   : > { %s312_s7 = scalar_lea.sflag [#allocation4], %s311_s6 }
  0x57   : > { %p415_p10 = pnand %p421_p9, %p668_p12 }
  0x59   : > { %p416_p1 = pneg %p415_p10 }
  0x5b   : > { %573 = dma.done.wait (%p416_p1), %s312_s7, 4096  }
  0x5c   : > { %575 = vsyncadd (%p416_p1), %s312_s7, 4294963200  ;;  %p16_p0 = scmp.ge.s32.totalorder %s637_s15, 10   ;;  %s864_s9 = smov %s582_s10 }
  0x5d   : > { %s865_s10 = smov %s586_s11  ;;  %s866_s11 = smov %s649_s18 }
  0x5e   : > { %s867_s12 = smov %s637_s15  ;;  %18 = sbr.rel (!%p16_p0) target bundleno = 6 (0x6), region = 77 }
  0x63   :  { %318 = vsyncpa [#allocation3], 1 }
  0x64   :  { %320 = vsyncpa [#allocation3 + $0x1], 1 }
  0x65   :  { %321 = vsyncpa [#allocation6], 1 }
  0x66   :  { %322 = vsyncpa [#allocation4], 1 }
  0x67   :  { %324 = vsyncpa [#allocation4 + $0x1], 1 }

</bundles_post_ra>
